<compile_context>
chip_gen: v7x
topology: tpu7x:2x2x1
jax: 0.10.0
libtpu: 0.0.40
codegen_flags: <defaults>
</compile_context>

<pallas_src>
import functools

import jax
import jax.numpy as jnp
from jax.experimental import pallas as pl
from jax.experimental.pallas import tpu as pltpu

BN_EPS = 1e-5  # nn.BatchNorm1d default


def _round_up(n, m):
    return ((n + m - 1) // m) * m


def _repnext_classifier_kernel(x_ref, w_ref, b_ref, o_ref):
    # out_tile = x_tile @ W_eff_tile + b_eff_tile   (BN already folded into W/b)
    y = jnp.dot(x_ref[...], w_ref[...], preferred_element_type=jnp.float32)
    o_ref[...] = (y + b_ref[...]).astype(o_ref.dtype)


def fold_repnext_classifier_params(bn1, bn2, w1_t, b1, w2_t, b2):
    """Fold eval-mode BatchNorm + both heads into one effective (W_eff, b_eff).

    Call ONCE at model-load / checkpoint-conversion time (pure parameter prep).

      W_eff = 0.5*(s1[:,None]*W1t + s2[:,None]*W2t),  s_i = gamma_i*rsqrt(var_i+eps)
      b_eff = 0.5*((t1@W1t + b1) + (t2@W2t + b2)),    t_i = beta_i - mu_i*s_i

    bn*:  (4, D) stacked [gamma, beta, running_mean, running_var]
    w*_t: (D, C) pre-transposed Linear weights
    b*:   (1, C) Linear biases
    Returns (W_eff as bf16 (D, C), b_eff as f32 (1, C)).
    Fold is done entirely in f32; bf16 cast happens last (per review).
    """
    def fold(bn, w_t, b):
        g = bn[0].astype(jnp.float32)
        be = bn[1].astype(jnp.float32)
        mu = bn[2].astype(jnp.float32)
        var = bn[3].astype(jnp.float32)
        s = g * jax.lax.rsqrt(var + BN_EPS)            # (D,)
        t = be - mu * s                                # (D,)
        w_eff = s[:, None] * w_t.astype(jnp.float32)   # (D, C)
        b_eff = t[None, :] @ w_t.astype(jnp.float32) + b.astype(jnp.float32)
        return w_eff, b_eff

    w1e, b1e = fold(bn1, w1_t, b1)
    w2e, b2e = fold(bn2, w2_t, b2)
    w_eff = 0.5 * (w1e + w2e)                          # (D, C) f32
    b_eff = 0.5 * (b1e + b2e)                          # (1, C) f32
    return w_eff.astype(jnp.bfloat16), b_eff.astype(jnp.float32)


@functools.partial(jax.jit, static_argnames=("block_b",))
def repnext_classifier_forward(x, w_eff, b_eff, *, block_b=1024):
    """Eval-mode RepNextClassifier forward with pre-folded parameters.

    x:     (B, D) float
    w_eff: (D, C) bf16   (from fold_repnext_classifier_params)
    b_eff: (1, C) f32
    returns (B, C) f32
    """
    B, D = x.shape
    C = w_eff.shape[1]

    xh = x.astype(jnp.bfloat16)  # bf16 activations; f32 accumulate in-kernel

    # Batch tile: multiple of 8, at least 2 grid steps when B permits (v7x
    # megacore), large (<= block_b) to amortize per-step overhead (v5e/v6e).
    TB = max(8, min(block_b, _round_up(pl.cdiv(B, 2), 8)))
    nb = pl.cdiv(B, TB)

    # Class-dim tiling only if the whole W_eff (plus buffering) won't fit VMEM.
    bf16_b, f32_b = 2, 4

    def vmem_need(tn):
        return (2 * TB * D * bf16_b          # x tiles (double-buffered)
                + 2 * D * tn * bf16_b        # W tiles
                + 2 * 1 * tn * f32_b         # bias tiles
                + 2 * TB * tn * f32_b)       # output tiles

    VMEM_BUDGET = 40 * 1024 * 1024           # conservative: fits v7x (64 MiB/TC)
    if vmem_need(C) <= VMEM_BUDGET:
        TN = C                               # full-dim block: no 128 rounding needed
    else:
        TN = _round_up(C, 128)
        while TN > 128 and vmem_need(TN) > VMEM_BUDGET:
            TN = max(128, _round_up(TN // 2, 128))
    nc = pl.cdiv(C, TN)

    vmem_limit = min(max(vmem_need(TN) + (4 << 20), 16 << 20), 48 << 20)

    out = pl.pallas_call(
        _repnext_classifier_kernel,
        out_shape=jax.ShapeDtypeStruct((B, C), jnp.float32),
        grid=(nb, nc),
        in_specs=[
            pl.BlockSpec((TB, D), lambda i, j: (i, 0)),   # x: streamed over batch
            pl.BlockSpec((D, TN), lambda i, j: (0, j)),   # W_eff: VMEM-resident / C-tiled
            pl.BlockSpec((1, TN), lambda i, j: (0, j)),   # b_eff
        ],
        out_specs=pl.BlockSpec((TB, TN), lambda i, j: (i, j)),
        compiler_params=pltpu.CompilerParams(
            dimension_semantics=("parallel", "parallel"),  # shard across TCs
            vmem_limit_bytes=vmem_limit,
        ),
    )(xh, w_eff, b_eff)

    return out


def _reference(x, bn1, bn2, w1_t, b1, w2_t, b2):
    """Unfused f32 reference: BN(eval) -> Linear per head, averaged."""
    def head(bn, w_t, b):
        g, be, mu, var = bn
        xn = (x - mu) / jnp.sqrt(var + BN_EPS) * g + be
        return xn @ w_t + b
    return (head(bn1, w1_t, b1) + head(bn2, w2_t, b2)) * 0.5


if __name__ == "__main__":
    B, DIM, NUM_CLASSES = 8, 32, 16

    key = jax.random.PRNGKey(0)
    kx, kw1, kw2, kg1, kb1, km1, kv1, kg2, kb2, km2, kv2 = jax.random.split(key, 11)

    x = jax.random.normal(kx, (B, DIM), dtype=jnp.float32)

    # Linear weights: trunc_normal(std=0.02), bias = 0 (per NormLinear.__init__).
    std = 0.02
    w1 = std * jax.random.truncated_normal(kw1, -2.0, 2.0, (NUM_CLASSES, DIM), jnp.float32)
    w2 = std * jax.random.truncated_normal(kw2, -2.0, 2.0, (NUM_CLASSES, DIM), jnp.float32)
    lb1 = jnp.zeros((1, NUM_CLASSES), jnp.float32)
    lb2 = jnp.zeros((1, NUM_CLASSES), jnp.float32)

    # BatchNorm1d params (eval-mode running stats); randomized deterministically
    # so the BN math is actually exercised. Stacked as [gamma, beta, mean, var].
    def bn_params(kg, kb, km, kv):
        gamma = 1.0 + 0.1 * jax.random.normal(kg, (DIM,), jnp.float32)
        beta = 0.1 * jax.random.normal(kb, (DIM,), jnp.float32)
        mean = 0.1 * jax.random.normal(km, (DIM,), jnp.float32)
        var = 1.0 + 0.1 * jax.random.uniform(kv, (DIM,), jnp.float32)
        return jnp.stack([gamma, beta, mean, var], axis=0)  # (4, D)

    bn1 = bn_params(kg1, kb1, km1, kv1)
    bn2 = bn_params(kg2, kb2, km2, kv2)

    w1_t = w1.T  # (D, C)
    w2_t = w2.T

    # One-time parameter fold (hoisted out of the forward path).
    w_eff, b_eff = fold_repnext_classifier_params(bn1, bn2, w1_t, lb1, w2_t, lb2)

    out = repnext_classifier_forward(x, w_eff, b_eff)
    out = jax.block_until_ready(out)

    ref = _reference(x,
                     (bn1[0], bn1[1], bn1[2], bn1[3]),
                     (bn2[0], bn2[1], bn2[2], bn2[3]),
                     w1_t, lb1, w2_t, lb2)

    assert out.shape == (B, NUM_CLASSES)
    # Loose tolerance: bf16 activations/weights with f32 accumulation.
    assert jnp.allclose(out, ref, atol=1e-2, rtol=1e-2), "mismatch vs reference"
    print("KERNEL_OK")
</pallas_src>

<mosaic_0001>
module attributes {stable_mosaic.version = 11 : i64} {
  func.func @_repnext_classifier_kernel(%arg0: i32, %arg1: i32, %arg2: memref<8x32xbf16, #tpu.memory_space<vmem>>, %arg3: memref<32x16xbf16, #tpu.memory_space<vmem>>, %arg4: memref<1x16xf32, #tpu.memory_space<vmem>>, %arg5: memref<8x16xf32, #tpu.memory_space<vmem>>) attributes {dimension_semantics = [#tpu.dimension_semantics<parallel>, #tpu.dimension_semantics<parallel>], iteration_bounds = array<i64: 1, 1>, scalar_prefetch = 0 : i64, scratch_operands = 0 : i64, tpu.core_type = #tpu.core_type<tc>, window_params = [{transform_indices = @transform_0, window_bounds = array<i64: 8, 32>}, {transform_indices = @transform_1, window_bounds = array<i64: 32, 16>}, {transform_indices = @transform_2, window_bounds = array<i64: 1, 16>}, {transform_indices = @transform_3, window_bounds = array<i64: 8, 16>}]} {
    %c0 = arith.constant 0 : index
    %c0_0 = arith.constant 0 : index
    %0 = vector.load %arg2[%c0, %c0_0] : memref<8x32xbf16, #tpu.memory_space<vmem>>, vector<8x32xbf16>
    %c0_1 = arith.constant 0 : index
    %c0_2 = arith.constant 0 : index
    %1 = vector.load %arg3[%c0_1, %c0_2] : memref<32x16xbf16, #tpu.memory_space<vmem>>, vector<32x16xbf16>
    %cst = arith.constant dense<0.000000e+00> : vector<8x16xf32>
    %2 = tpu.matmul %0, %1, %cst {dimension_numbers = #tpu.dot_dimension_numbers<[1], [0], [0], [1], [0, 0, 1, 1], [], []>} : vector<8x32xbf16>, vector<32x16xbf16>, vector<8x16xf32> -> vector<8x16xf32>
    %c0_3 = arith.constant 0 : index
    %c0_4 = arith.constant 0 : index
    %3 = vector.load %arg4[%c0_3, %c0_4] : memref<1x16xf32, #tpu.memory_space<vmem>>, vector<1x16xf32>
    %4 = vector.broadcast %3 : vector<1x16xf32> to vector<8x16xf32>
    %5 = arith.addf %2, %4 : vector<8x16xf32>
    %c0_5 = arith.constant 0 : index
    %c0_6 = arith.constant 0 : index
    %6 = vector.load %arg5[%c0_5, %c0_6] : memref<8x16xf32, #tpu.memory_space<vmem>>, vector<8x16xf32>
    tpu.vector_store %arg5[%c0_5, %c0_6], %5 {strides = array<i32>} : memref<8x16xf32, #tpu.memory_space<vmem>>, vector<8x16xf32>,
    return
  }
  func.func @transform_0(%arg0: i32, %arg1: i32) -> (i32, i32) {
    %c0_i32 = arith.constant 0 : i32
    %c0_i32_0 = arith.constant 0 : i32
    return %arg0, %c0_i32 : i32, i32
  }
  func.func @transform_1(%arg0: i32, %arg1: i32) -> (i32, i32) {
    %c0_i32 = arith.constant 0 : i32
    %c0_i32_0 = arith.constant 0 : i32
    return %c0_i32, %arg1 : i32, i32
  }
  func.func @transform_2(%arg0: i32, %arg1: i32) -> (i32, i32) {
    %c0_i32 = arith.constant 0 : i32
    %c0_i32_0 = arith.constant 0 : i32
    return %c0_i32, %arg1 : i32, i32
  }
  func.func @transform_3(%arg0: i32, %arg1: i32) -> (i32, i32) {
    %c0_i32 = arith.constant 0 : i32
    return %arg0, %arg1 : i32, i32
  }
}

</mosaic_0001>

<bundles_post_ra>
// kernel: repnext_classifier_forward.1
= control target key start
LH: loop header
LB: loop body
LE: loop exit
PB: predicated region body
PF: predicated region fallthrough
CT: control target
= control target key end

     0   :  { %v144_v1 = vmov 0.0   ;;  %vm145_vm0 = vmmov 0   ;;  %s191_s0 = inlined_call_operand.vmem [shape: bf16[8,32], index: 0, kind: input, shape index: {}]   ;;  %s192_s1 = inlined_call_operand.vmem [shape: bf16[32,16], index: 1, kind: input, shape index: {}]   ;;  %s193_s2 = inlined_call_operand.vmem [shape: f32[1,16], index: 2, kind: input, shape index: {}]   ;;  %s194_s3 = inlined_call_operand.hbm [shape: f32[8,16], index: 3, kind: output, shape index: {}]  }
   0x1   :  { %v118_v0 = vld [vmem:[%s192_s1] sm:$0xff]   ;;  %107 = vmatprep.subr.bf16.mxu0 %v144_v1  ;;  %v119_v2 = vld [vmem:[%s192_s1 + $0x8] sm:$0xff]   ;;  %111 = vmatprep.mubr.msk.bf16.mxu0 %vm145_vm0, %v144_v1 }
   0x2   :  { %108 = vmatpush3.bf16.msra.mxu0 %v118_v0 }
   0x3   :  { %109 = vmatprep.subr.bf16.mxu0 %v144_v1 }
   0x4   :  { %8 = vsyncpa [#allocation3], 0  ;;  %v16_v3 = vld [vmem:[%s191_s0] sm:$0xf]  ;;  %vm40_vm1 = vcmask 261120   ;;  %s146_s20 = smov [#allocation2]  }
   0x5   :  { %v100_v4 = vld [vmem:[%s193_s2] ss:$0 sm:$0xff]  ;;  %s92_s21 = sshll.u32 %s146_s20, 4  ;;  %vm84_vm2 = vcmask 130048   ;;  %s93_s21 = int_to_ptr.vmem [resolvable:$true] %s92_s21 }
   0x6   :  { %110 = vmatpush3.bf16.msra.mxu0 %v119_v2  ;;  %s120_s1 = scalar_lea.vmem %s93_s21, 128  ;;  %p125_p1 = scmp.lt.s32.totalorder %s93_s21, %s93_s21 }
   0x7   :  { %p121_p0 = scmp.ne.s32.totalorder %s93_s21, %s120_s1  ;;  %p126_p2 = scmp.lt.s32.totalorder %s120_s1, %s120_s1 }
   0x9   :  { %112 = vmatmul.mubr.msk.bf16.vlgmr.msra.gmra.mrb[0].mxu0 %vm40_vm1, %v16_v3  ;;  %p127_p3 = por %p126_p2, %p125_p1 }
   0xb   :  { %p128_p4 = pnand %p127_p3, %p121_p0 }
  0xdc   :  { %v78_v5 = vpop.f32.mrb[0].mxu0 }
  0xdd   :  { %v79_v6 = vadd.f32 %v100_v4, %v78_v5  ;;  %v113_v7 = vpop.f32.mrb[1].mxu0 }
  0xde   :  { %v81_v8 = vpop.f32.mrb[2].mxu0 }
  0xdf   :  { %v114_v9 = vpop.f32.mrb[3].mxu0  ;;  %85 = vst.msk [vmem:[#allocation2] sm:$0xff] %vm84_vm2, %v79_v6 }
  0xe0   :  { %131 = shalt.err (!%p128_p4)
}
  0xe1   :  { %s132_s2 = scalar_lea.hbm %s194_s3, 128 }
  0xe2   :  { %p133_p5 = scmp.ne.s32.totalorder %s194_s3, %s132_s2  ;;  %p136_p6 = scmp.lt.u32.totalorder %s132_s2, %s194_s3 }
  0xe4   :  { %p138_p7 = pnand %p136_p6, %p133_p5 }
  0xe6   :  { %141 = shalt.err (!%p138_p7)
}
  0xe7   :  { %95 = dma.vmem_to_hbm [thread:$0]  %s93_s21, 128, %s194_s3, [#allocation3]  }
  0xe8   :  { %142 = dma.done.wait [#allocation3], 128  }
  0xe9   :  { %143 = vsyncadd [#allocation3], 4294967168 }
  0xea   :  { %99 = vsyncpa [#allocation3], 1 }

</bundles_post_ra>
